<compile_context>
chip_gen: v6e
topology: v6e:2x2x1
jax: 0.10.0
libtpu: 0.0.40
codegen_flags: <defaults>
</compile_context>

<pallas_src>
import functools

import jax
import jax.numpy as jnp
from jax.experimental import pallas as pl
from jax.experimental.pallas import tpu as pltpu

LANE = 128      # TPU lane width (last dim)
SUBLANE = 8     # TPU sublane width (second-to-last dim)


def _round_up(n, m):
    return (n + m - 1) // m * m


# ---------------------------------------------------------------------------
# Fused network kernel: all layers, one batch tile per grid step.
# refs layout: for each layer i -> (w_i, b_i) and, for ReLU layers only, (exp_i);
# the final ref is the output tile.
# ---------------------------------------------------------------------------
def fused_network_kernel(x_ref, *refs, layer_has_relu):
    o_ref = refs[-1]
    param_refs = refs[:-1]

    h = x_ref[...].astype(jnp.float32)          # [TB, D0_pad]
    idx = 0
    for relu in layer_has_relu:                 # static Python loop (few layers)
        w_ref = param_refs[idx]                 # [Din_pad, Dout_pad]  (pole-folded)
        b_ref = param_refs[idx + 1]             # [1, Dout_pad] (pole-folded bias;
        idx += 2                                #  exp_base folded in on last layer)
        acc = jnp.dot(h, w_ref[...], preferred_element_type=jnp.float32)
        acc = acc + b_ref[...]
        if relu:                                # non_linearity, then Euclidean exp map
            e_ref = param_refs[idx]
            idx += 1
            acc = jnp.maximum(acc, 0.0) + e_ref[...]
        h = acc
    o_ref[...] = h.astype(o_ref.dtype)


# ---------------------------------------------------------------------------
# Parameter preparation: fold pole log-maps into (W_eff, b_eff), pad to 128 lanes.
# ---------------------------------------------------------------------------
def prepare_layer_params(layer_params):
    n_layers = len(layer_params)
    prepped = []
    for i, p in enumerate(layer_params):
        log_base, w_t, bias, exp_base = p["log_base"], p["w_t"], p["bias"], p["exp_base"]
        num_poles, d_in = log_base.shape
        d_out = w_t.shape[1]
        is_last = (i == n_layers - 1)

        # Euclidean pole folding:  flat @ w_t == x @ W_eff - sum_p log_base[p] @ W_p
        w3 = w_t.reshape(num_poles, d_in, d_out)
        w_eff = w3.sum(axis=0)                                          # [Din, Dout]
        b_eff = bias - jnp.einsum("pd,pdo->o", log_base, w3)[None, :]   # [1, Dout]
        if is_last:                       # no ReLU on last layer -> fold exp_base too
            b_eff = b_eff + exp_base

        d_in_p = _round_up(d_in, LANE)
        d_out_p = _round_up(d_out, LANE)
        w_pad = jnp.zeros((d_in_p, d_out_p), jnp.float32).at[:d_in, :d_out].set(w_eff)
        b_pad = jnp.zeros((1, d_out_p), jnp.float32).at[:, :d_out].set(b_eff)

        entry = {"w": w_pad, "b": b_pad, "relu": not is_last,
                 "d_in": d_in, "d_out": d_out}
        if not is_last:
            entry["exp"] = jnp.zeros((1, d_out_p), jnp.float32).at[:, :d_out].set(exp_base)
        prepped.append(entry)
    return prepped


# ---------------------------------------------------------------------------
# ManifoldNetwork.forward
# ---------------------------------------------------------------------------
def manifold_network_forward(x, layer_params, *, batch_tile=512):
    prepped = prepare_layer_params(layer_params)

    batch, d0 = x.shape
    d0_p = prepped[0]["w"].shape[0]
    d_last = prepped[-1]["d_out"]
    d_last_p = prepped[-1]["w"].shape[1]

    # Batch tiling: sublane-aligned tile, padded batch a multiple of the tile.
    tb = _round_up(min(batch_tile, _round_up(batch, SUBLANE)), SUBLANE)
    b_pad = _round_up(batch, tb)

    x_p = jnp.zeros((b_pad, d0_p), x.dtype).at[:batch, :d0].set(x)

    layer_has_relu = tuple(p["relu"] for p in prepped)

    def pinned(shape):
        return pl.BlockSpec(shape, lambda i: (0, 0))   # weights resident across tiles

    inputs = [x_p]
    in_specs = [pl.BlockSpec((tb, d0_p), lambda i: (i, 0))]
    for p in prepped:
        inputs += [p["w"], p["b"]]
        in_specs += [pinned(p["w"].shape), pinned(p["b"].shape)]
        if p["relu"]:
            inputs.append(p["exp"])
            in_specs.append(pinned(p["exp"].shape))

    kernel = functools.partial(fused_network_kernel, layer_has_relu=layer_has_relu)

    # VMEM budget: resident (pole-folded) weights + double-buffered x/out tiles.
    # Capped at 60 MiB so a tile that fits v6e (128 MiB) never overshoots v7x (64 MiB).
    weight_bytes = sum(int(a.size) * a.dtype.itemsize for a in inputs[1:])
    act_bytes = 4 * tb * (d0_p + d_last_p) * 2
    vmem_limit = int(min(60 * 2**20, max(16 * 2**20, 2 * (weight_bytes + act_bytes))))

    out_p = pl.pallas_call(
        kernel,
        out_shape=jax.ShapeDtypeStruct((b_pad, d_last_p), x.dtype),
        grid=(b_pad // tb,),
        in_specs=in_specs,
        out_specs=pl.BlockSpec((tb, d_last_p), lambda i: (i, 0)),
        compiler_params=pltpu.CompilerParams(
            dimension_semantics=("parallel",),     # megacore: shard batch tiles
            vmem_limit_bytes=vmem_limit),
    )(*inputs)

    return out_p[:batch, :d_last]


# ---------------------------------------------------------------------------
# Pure-JAX reference of the ORIGINAL (per-pole, unfolded) forward pass.
# ---------------------------------------------------------------------------
def manifold_network_reference(x, layer_params):
    out = x
    n_layers = len(layer_params)
    for i, p in enumerate(layer_params):
        log_base, w_t, bias, exp_base = p["log_base"], p["w_t"], p["bias"], p["exp_base"]
        num_poles, d_in = log_base.shape
        log_x = out[:, None, :] - log_base[None, :, :]           # [B, P, Din]  (log map)
        flat = log_x.reshape(out.shape[0], num_poles * d_in)     # [B, P*Din]
        lin = flat @ w_t + bias                                  # Linear
        if i != n_layers - 1:
            lin = jnp.maximum(lin, 0.0)                          # non_linearity
        out = exp_base + lin                                     # exp map
    return out


def make_params(key, dimension_seq, num_poles):
    """Deterministic parameters (shapes mirror ManifoldLayer.__init__)."""
    params = []
    for i in range(len(dimension_seq) - 1):
        d_in, d_out = dimension_seq[i], dimension_seq[i + 1]
        key, k_lb, k_w, k_b, k_eb = jax.random.split(key, 5)
        log_base = 0.1 * jax.random.normal(k_lb, (num_poles, d_in), jnp.float32)
        # torch nn.Linear(num_poles*d_in -> d_out): weight [d_out, P*d_in]; store W.T
        w = 0.1 * jax.random.normal(k_w, (d_out, num_poles * d_in), jnp.float32)
        bias = 0.05 * jax.random.normal(k_b, (1, d_out), jnp.float32)
        exp_base = 0.1 * jax.random.normal(k_eb, (1, d_out), jnp.float32)
        params.append({"log_base": log_base, "w_t": w.T, "bias": bias,
                       "exp_base": exp_base})
    return params


if __name__ == "__main__":
    # Small network: 3 Euclidean manifolds -> 2 ManifoldLayers, ReLU between them.
    dimension_seq = [16, 32, 8]
    num_poles = 2
    batch = 8

    key = jax.random.PRNGKey(0)
    key, kx = jax.random.split(key)
    x = jax.random.normal(kx, (batch, dimension_seq[0]), jnp.float32)
    params = make_params(key, dimension_seq, num_poles)

    out = jax.block_until_ready(manifold_network_forward(x, params))
    ref = jax.block_until_ready(manifold_network_reference(x, params))

    assert out.shape == (batch, dimension_seq[-1]), out.shape
    assert jnp.allclose(out, ref, atol=1e-4, rtol=1e-4), "mismatch vs JAX reference"
    print("KERNEL_OK")
</pallas_src>

<mosaic_0001>
module attributes {stable_mosaic.version = 11 : i64} {
  func.func @fused_network_kernel(%arg0: i32, %arg1: memref<8x128xf32, #tpu.memory_space<vmem>>, %arg2: memref<128x128xf32, #tpu.memory_space<vmem>>, %arg3: memref<1x128xf32, #tpu.memory_space<vmem>>, %arg4: memref<1x128xf32, #tpu.memory_space<vmem>>, %arg5: memref<128x128xf32, #tpu.memory_space<vmem>>, %arg6: memref<1x128xf32, #tpu.memory_space<vmem>>, %arg7: memref<8x128xf32, #tpu.memory_space<vmem>>) attributes {dimension_semantics = [#tpu.dimension_semantics<parallel>], iteration_bounds = array<i64: 1>, scalar_prefetch = 0 : i64, scratch_operands = 0 : i64, tpu.core_type = #tpu.core_type<tc>, window_params = [{transform_indices = @transform_0, window_bounds = array<i64: 8, 128>}, {pipeline_mode = #tpu.pipeline_mode<synchronous>, transform_indices = @transform_1, window_bounds = array<i64: 128, 128>}, {pipeline_mode = #tpu.pipeline_mode<synchronous>, transform_indices = @transform_2, window_bounds = array<i64: 1, 128>}, {pipeline_mode = #tpu.pipeline_mode<synchronous>, transform_indices = @transform_3, window_bounds = array<i64: 1, 128>}, {pipeline_mode = #tpu.pipeline_mode<synchronous>, transform_indices = @transform_4, window_bounds = array<i64: 128, 128>}, {pipeline_mode = #tpu.pipeline_mode<synchronous>, transform_indices = @transform_5, window_bounds = array<i64: 1, 128>}, {transform_indices = @transform_6, window_bounds = array<i64: 8, 128>}]} {
    %c0 = arith.constant 0 : index
    %c0_0 = arith.constant 0 : index
    %0 = vector.load %arg1[%c0, %c0_0] : memref<8x128xf32, #tpu.memory_space<vmem>>, vector<8x128xf32>
    %c0_1 = arith.constant 0 : index
    %c0_2 = arith.constant 0 : index
    %1 = vector.load %arg2[%c0_1, %c0_2] : memref<128x128xf32, #tpu.memory_space<vmem>>, vector<128x128xf32>
    %cst = arith.constant dense<0.000000e+00> : vector<8x128xf32>
    %2 = tpu.matmul %0, %1, %cst {dimension_numbers = #tpu.dot_dimension_numbers<[1], [0], [0], [1], [0, 0, 1, 1], [], []>} : vector<8x128xf32>, vector<128x128xf32>, vector<8x128xf32> -> vector<8x128xf32>
    %c0_3 = arith.constant 0 : index
    %c0_4 = arith.constant 0 : index
    %3 = vector.load %arg3[%c0_3, %c0_4] : memref<1x128xf32, #tpu.memory_space<vmem>>, vector<1x128xf32>
    %4 = vector.broadcast %3 : vector<1x128xf32> to vector<8x128xf32>
    %5 = arith.addf %2, %4 : vector<8x128xf32>
    %cst_5 = arith.constant 0.000000e+00 : f32
    %6 = vector.broadcast %cst_5 : f32 to vector<8x128xf32>
    %7 = arith.maximumf %5, %6 : vector<8x128xf32>
    %c0_6 = arith.constant 0 : index
    %c0_7 = arith.constant 0 : index
    %8 = vector.load %arg4[%c0_6, %c0_7] : memref<1x128xf32, #tpu.memory_space<vmem>>, vector<1x128xf32>
    %9 = vector.broadcast %8 : vector<1x128xf32> to vector<8x128xf32>
    %10 = arith.addf %7, %9 : vector<8x128xf32>
    %c0_8 = arith.constant 0 : index
    %c0_9 = arith.constant 0 : index
    %11 = vector.load %arg5[%c0_8, %c0_9] : memref<128x128xf32, #tpu.memory_space<vmem>>, vector<128x128xf32>
    %cst_10 = arith.constant dense<0.000000e+00> : vector<8x128xf32>
    %12 = tpu.matmul %10, %11, %cst_10 {dimension_numbers = #tpu.dot_dimension_numbers<[1], [0], [0], [1], [0, 0, 1, 1], [], []>} : vector<8x128xf32>, vector<128x128xf32>, vector<8x128xf32> -> vector<8x128xf32>
    %c0_11 = arith.constant 0 : index
    %c0_12 = arith.constant 0 : index
    %13 = vector.load %arg6[%c0_11, %c0_12] : memref<1x128xf32, #tpu.memory_space<vmem>>, vector<1x128xf32>
    %14 = vector.broadcast %13 : vector<1x128xf32> to vector<8x128xf32>
    %15 = arith.addf %12, %14 : vector<8x128xf32>
    %c0_13 = arith.constant 0 : index
    %c0_14 = arith.constant 0 : index
    %16 = vector.load %arg7[%c0_13, %c0_14] : memref<8x128xf32, #tpu.memory_space<vmem>>, vector<8x128xf32>
    tpu.vector_store %arg7[%c0_13, %c0_14], %15 {strides = array<i32>} : memref<8x128xf32, #tpu.memory_space<vmem>>, vector<8x128xf32>,
    return
  }
  func.func @transform_0(%arg0: i32) -> (i32, i32) {
    %c0_i32 = arith.constant 0 : i32
    %c0_i32_0 = arith.constant 0 : i32
    return %arg0, %c0_i32 : i32, i32
  }
  func.func @transform_1(%arg0: i32) -> (i32, i32) {
    %c0_i32 = arith.constant 0 : i32
    %c0_i32_0 = arith.constant 0 : i32
    %c0_i32_1 = arith.constant 0 : i32
    return %c0_i32, %c0_i32_0 : i32, i32
  }
  func.func @transform_2(%arg0: i32) -> (i32, i32) {
    %c0_i32 = arith.constant 0 : i32
    %c0_i32_0 = arith.constant 0 : i32
    %c0_i32_1 = arith.constant 0 : i32
    return %c0_i32, %c0_i32_0 : i32, i32
  }
  func.func @transform_3(%arg0: i32) -> (i32, i32) {
    %c0_i32 = arith.constant 0 : i32
    %c0_i32_0 = arith.constant 0 : i32
    %c0_i32_1 = arith.constant 0 : i32
    return %c0_i32, %c0_i32_0 : i32, i32
  }
  func.func @transform_4(%arg0: i32) -> (i32, i32) {
    %c0_i32 = arith.constant 0 : i32
    %c0_i32_0 = arith.constant 0 : i32
    %c0_i32_1 = arith.constant 0 : i32
    return %c0_i32, %c0_i32_0 : i32, i32
  }
  func.func @transform_5(%arg0: i32) -> (i32, i32) {
    %c0_i32 = arith.constant 0 : i32
    %c0_i32_0 = arith.constant 0 : i32
    %c0_i32_1 = arith.constant 0 : i32
    return %c0_i32, %c0_i32_0 : i32, i32
  }
  func.func @transform_6(%arg0: i32) -> (i32, i32) {
    %c0_i32 = arith.constant 0 : i32
    %c0_i32_0 = arith.constant 0 : i32
    return %arg0, %c0_i32 : i32, i32
  }
}

</mosaic_0001>

<bundles_post_ra>
// kernel: tpu_custom_call.1
= control target key start
LH: loop header
LB: loop body
LE: loop exit
PB: predicated region body
PF: predicated region fallthrough
CT: control target
= control target key end

     0   :  { %11 = vsyncpa [#allocation3], 0  ;;  %s575_s0 = inlined_call_operand.hbm [shape: f32[8,128], index: 0, kind: input, shape index: {}]   ;;  %s576_s1 = inlined_call_operand.hbm [shape: f32[128,128], index: 1, kind: input, shape index: {}]   ;;  %s577_s2 = inlined_call_operand.vmem [shape: f32[1,128], index: 2, kind: input, shape index: {}]   ;;  %s578_s3 = inlined_call_operand.vmem [shape: f32[1,128], index: 3, kind: input, shape index: {}]   ;;  %s579_s4 = inlined_call_operand.hbm [shape: f32[128,128], index: 4, kind: input, shape index: {}]   ;;  %s580_s5 = inlined_call_operand.vmem [shape: f32[1,128], index: 5, kind: input, shape index: {}]   ;;  %s581_s6 = inlined_call_operand.hbm [shape: f32[8,128], index: 6, kind: output, shape index: {}]  }
   0x1   :  { %12 = vsyncpa [#allocation6], 0 }
   0x2   :  { %13 = vsyncpa [#allocation4], 0  ;;  %s477_s21 = smov [#allocation5]  }
   0x3   :  { %s29_s22 = sshll.u32 %s477_s21, 4  ;;  %s30_s22 = int_to_ptr.vmem [resolvable:$true] %s29_s22 }
   0x4   :  { %s399_s23 = scalar_lea.vmem %s30_s22, 2048  ;;  %p404_p1 = scmp.lt.s32.totalorder %s30_s22, %s30_s22 }
   0x5   :  { %p400_p0 = scmp.ne.s32.totalorder %s30_s22, %s399_s23  ;;  %p405_p2 = scmp.lt.s32.totalorder %s399_s23, %s399_s23 }
   0x7   :  { %p406_p3 = por %p405_p2, %p404_p1 }
   0x9   :  { %p407_p4 = pnand %p406_p3, %p400_p0 }
   0xb   :  { %410 = shalt.err (!%p407_p4)
}
   0xc   :  { %s478_s24 = smov 128   ;;  %s479_s25 = smov 8  }
   0xd   :  { %35 = dma.hbm_to_vmem [thread:$0]  %s576_s1, 2048, %s30_s22, [#allocation6], %s478_s24, %s478_s24, %s479_s25  }
   0xe   :  { %s480_s28 = smov [#allocation2]   ;;  %s481_s30 = smov [#allocation7]  }
   0xf   :  { %s20_s29 = sshll.u32 %s480_s28, 4  ;;  %s45_s7 = sshll.u32 %s481_s30, 4  ;;  %s21_s29 = int_to_ptr.vmem [resolvable:$true] %s20_s29  ;;  %s46_s7 = int_to_ptr.vmem [resolvable:$true] %s45_s7 }
  0x10   :  { %s419_s8 = scalar_lea.vmem %s21_s29, 128  ;;  %p424_p6 = scmp.lt.s32.totalorder %s21_s29, %s21_s29 }
  0x11   :  { %p420_p5 = scmp.ne.s32.totalorder %s21_s29, %s419_s8  ;;  %p425_p7 = scmp.lt.s32.totalorder %s419_s8, %s419_s8 }
  0x13   :  { %p426_p8 = por %p425_p7, %p424_p6 }
  0x15   :  { %p427_p9 = pnand %p426_p8, %p420_p5 }
  0x17   :  { %430 = shalt.err (!%p427_p9)
}
  0x18   :  { %23 = dma.hbm_to_vmem [thread:$0]  %s575_s0, 128, %s21_s29, [#allocation3]  }
  0x19   :  { %s439_s11 = scalar_lea.vmem %s46_s7, 2048  ;;  %p444_p11 = scmp.lt.s32.totalorder %s46_s7, %s46_s7 }
  0x1a   :  { %p440_p10 = scmp.ne.s32.totalorder %s46_s7, %s439_s11  ;;  %p445_p12 = scmp.lt.s32.totalorder %s439_s11, %s439_s11 }
  0x1c   :  { %p446_p13 = por %p445_p12, %p444_p11 }
  0x1e   :  { %p447_p0 = pnand %p446_p13, %p440_p10 }
  0x20   :  { %450 = shalt.err (!%p447_p0)
}
  0x21   :  { %51 = dma.hbm_to_vmem [thread:$0]  %s579_s4, 2048, %s46_s7, [#allocation6], %s478_s24, %s478_s24, %s479_s25  }
  0x22   :  { %471 = dma.done.wait [#allocation3], 128  }
  0x23   :  { %472 = vsyncadd [#allocation3], 4294967168 }
  0x24   :  { %473 = dma.done.wait [#allocation6], 4096  }
  0x25   :  { %474 = vsyncadd [#allocation6], 4294963200  ;;  %v482_v0 = vmov 0.0   ;;  %vm483_vm0 = vmmov 0   ;;  %v79_v1 = vld [vmem:[#allocation5 + $0x78] sm:$0xff]  ;;  %v78_v2 = vld [vmem:[#allocation5 + $0x70] sm:$0xff] }
  0x26   :  { %313 = vmatprep.subr.mxu0 %v482_v0  ;;  %345 = vmatprep.mubr.msk.f32.mxu0 %vm483_vm0, %v482_v0  ;;  %v77_v3 = vld [vmem:[#allocation5 + $0x68] sm:$0xff]  ;;  %v76_v4 = vld [vmem:[#allocation5 + $0x60] sm:$0xff]  ;;  %v181_v5 = vld [vmem:[#allocation7 + $0x78] sm:$0xff]  ;;  %s484_s17 = smov [#allocation8]  }
  0x27   :  { %348 = vmatprep.subr.mxu1 %v482_v0  ;;  %380 = vmatprep.mubr.msk.f32.mxu1 %vm483_vm0, %v482_v0  ;;  %v75_v6 = vld [vmem:[#allocation5 + $0x58] sm:$0xff]  ;;  %v180_v7 = vld [vmem:[#allocation7 + $0x70] sm:$0xff]  ;;  %v179_v8 = vld [vmem:[#allocation7 + $0x68] sm:$0xff]  ;;  %s266_s18 = sshll.u32 %s484_s17, 4  ;;  %s267_s18 = int_to_ptr.vmem [resolvable:$true] %s266_s18 }
  0x28   :  { %314 = vmatpush3.msra.mxu0 %v79_v1  ;;  %349 = vmatpush3.msra.mxu1 %v181_v5  ;;  %v74_v9 = vld [vmem:[#allocation5 + $0x50] sm:$0xff]  ;;  %v178_v10 = vld [vmem:[#allocation7 + $0x60] sm:$0xff]  ;;  %v73_v11 = vld [vmem:[#allocation5 + $0x48] sm:$0xff]  ;;  %p456_p2 = scmp.lt.s32.totalorder %s267_s18, %s267_s18 }
  0x29   :  { %315 = vmatprep.subr.mxu0 %v482_v0  ;;  %350 = vmatprep.subr.mxu1 %v482_v0  ;;  %v177_v12 = vld [vmem:[#allocation7 + $0x58] sm:$0xff]  ;;  %v72_v13 = vld [vmem:[#allocation5 + $0x40] sm:$0xff]  ;;  %v176_v14 = vld [vmem:[#allocation7 + $0x50] sm:$0xff] }
  0x2a   :  { %316 = vmatpush3.msra.mxu0 %v78_v2  ;;  %351 = vmatpush3.msra.mxu1 %v180_v7  ;;  %v71_v15 = vld [vmem:[#allocation5 + $0x38] sm:$0xff]  ;;  %v175_v16 = vld [vmem:[#allocation7 + $0x48] sm:$0xff]  ;;  %v70_v17 = vld [vmem:[#allocation5 + $0x30] sm:$0xff] }
  0x2b   :  { %317 = vmatprep.subr.mxu0 %v482_v0  ;;  %352 = vmatprep.subr.mxu1 %v482_v0  ;;  %v174_v18 = vld [vmem:[#allocation7 + $0x40] sm:$0xff]  ;;  %v69_v19 = vld [vmem:[#allocation5 + $0x28] sm:$0xff]  ;;  %v173_v20 = vld [vmem:[#allocation7 + $0x38] sm:$0xff] }
  0x2c   :  { %318 = vmatpush3.msra.mxu0 %v77_v3  ;;  %353 = vmatpush3.msra.mxu1 %v179_v8  ;;  %v68_v21 = vld [vmem:[#allocation5 + $0x20] sm:$0xff]  ;;  %v172_v22 = vld [vmem:[#allocation7 + $0x30] sm:$0xff]  ;;  %v67_v23 = vld [vmem:[#allocation5 + $0x18] sm:$0xff] }
  0x2d   :  { %319 = vmatprep.subr.mxu0 %v482_v0  ;;  %354 = vmatprep.subr.mxu1 %v482_v0  ;;  %v171_v24 = vld [vmem:[#allocation7 + $0x28] sm:$0xff]  ;;  %v66_v25 = vld [vmem:[#allocation5 + $0x10] sm:$0xff]  ;;  %v170_v26 = vld [vmem:[#allocation7 + $0x20] sm:$0xff] }
  0x2e   :  { %320 = vmatpush3.msra.mxu0 %v76_v4  ;;  %355 = vmatpush3.msra.mxu1 %v178_v10  ;;  %v65_v27 = vld [vmem:[#allocation5 + $0x8] sm:$0xff]  ;;  %v64_v28 = vld [vmem:[#allocation5] sm:$0xff]  ;;  %v63_v29 = vld [vmem:[#allocation2] sm:$0xff] }
  0x2f   :  { %321 = vmatprep.subr.mxu0 %v482_v0  ;;  %356 = vmatprep.subr.mxu1 %v482_v0  ;;  %v169_v30 = vld [vmem:[#allocation7 + $0x18] sm:$0xff]  ;;  %v168_v31 = vld [vmem:[#allocation7 + $0x10] sm:$0xff]  ;;  %v167_v32 = vld [vmem:[#allocation7 + $0x8] sm:$0xff] }
  0x30   :  { %322 = vmatpush3.msra.mxu0 %v75_v6  ;;  %357 = vmatpush3.msra.mxu1 %v177_v12  ;;  %v166_v33 = vld [vmem:[#allocation7] sm:$0xff]  ;;  %v276_v34 = vld [vmem:[%s577_s2] ss:$0 sm:$0xff]  ;;  %s451_s2 = scalar_lea.vmem %s267_s18, 128 }
  0x31   :  { %323 = vmatprep.subr.mxu0 %v482_v0  ;;  %358 = vmatprep.subr.mxu1 %v482_v0  ;;  %v277_v37 = vld [vmem:[%s578_s3] ss:$0 sm:$0xff]  ;;  %p452_p1 = scmp.ne.s32.totalorder %s267_s18, %s451_s2  ;;  %p457_p3 = scmp.lt.s32.totalorder %s451_s2, %s451_s2 }
  0x32   :  { %324 = vmatpush3.msra.mxu0 %v74_v9  ;;  %359 = vmatpush3.msra.mxu1 %v176_v14  ;;  %v278_v41 = vld [vmem:[%s580_s5] ss:$0 sm:$0xff] }
  0x33   :  { %325 = vmatprep.subr.mxu0 %v482_v0  ;;  %360 = vmatprep.subr.mxu1 %v482_v0  ;;  %p458_p4 = por %p457_p3, %p456_p2 }
  0x34   :  { %326 = vmatpush3.msra.mxu0 %v73_v11  ;;  %361 = vmatpush3.msra.mxu1 %v175_v16 }
  0x35   :  { %327 = vmatprep.subr.mxu0 %v482_v0  ;;  %362 = vmatprep.subr.mxu1 %v482_v0  ;;  %p459_p5 = pnand %p458_p4, %p452_p1 }
  0x36   :  { %328 = vmatpush3.msra.mxu0 %v72_v13  ;;  %363 = vmatpush3.msra.mxu1 %v174_v18 }
  0x37   :  { %329 = vmatprep.subr.mxu0 %v482_v0  ;;  %364 = vmatprep.subr.mxu1 %v482_v0 }
  0x38   :  { %330 = vmatpush3.msra.mxu0 %v71_v15  ;;  %365 = vmatpush3.msra.mxu1 %v173_v20 }
  0x39   :  { %331 = vmatprep.subr.mxu0 %v482_v0  ;;  %366 = vmatprep.subr.mxu1 %v482_v0 }
  0x3a   :  { %332 = vmatpush3.msra.mxu0 %v70_v17  ;;  %367 = vmatpush3.msra.mxu1 %v172_v22 }
  0x3b   :  { %333 = vmatprep.subr.mxu0 %v482_v0  ;;  %368 = vmatprep.subr.mxu1 %v482_v0 }
  0x3c   :  { %334 = vmatpush3.msra.mxu0 %v69_v19  ;;  %369 = vmatpush3.msra.mxu1 %v171_v24 }
  0x3d   :  { %335 = vmatprep.subr.mxu0 %v482_v0  ;;  %370 = vmatprep.subr.mxu1 %v482_v0 }
  0x3e   :  { %336 = vmatpush3.msra.mxu0 %v68_v21  ;;  %371 = vmatpush3.msra.mxu1 %v170_v26 }
  0x3f   :  { %337 = vmatprep.subr.mxu0 %v482_v0  ;;  %372 = vmatprep.subr.mxu1 %v482_v0 }
  0x40   :  { %338 = vmatpush3.msra.mxu0 %v67_v23  ;;  %373 = vmatpush3.msra.mxu1 %v169_v30 }
  0x41   :  { %339 = vmatprep.subr.mxu0 %v482_v0  ;;  %374 = vmatprep.subr.mxu1 %v482_v0 }
  0x42   :  { %340 = vmatpush3.msra.mxu0 %v66_v25  ;;  %375 = vmatpush3.msra.mxu1 %v168_v31 }
  0x43   :  { %341 = vmatprep.subr.mxu0 %v482_v0  ;;  %376 = vmatprep.subr.mxu1 %v482_v0 }
  0x44   :  { %342 = vmatpush3.msra.mxu0 %v65_v27  ;;  %377 = vmatpush3.msra.mxu1 %v167_v32 }
  0x45   :  { %343 = vmatprep.subr.mxu0 %v482_v0  ;;  %378 = vmatprep.subr.mxu1 %v482_v0 }
  0x46   :  { %344 = vmatpush3.msra.mxu0 %v64_v28  ;;  %379 = vmatpush3.msra.mxu1 %v166_v33 }
  0x47   :  { %346 = vmatmul.mubr.f32.vlgmr.msra.gmra.mxu0 %v63_v29 }
 0x107   :  { %v153_v35 = vpop.f32.mrf.mxu0 }
 0x108   :  { %v154_v36 = vadd.f32 %v276_v34, %v153_v35 }
 0x109   :  { %v347_v38 = vpop.f32.mrf.mxu0 }
 0x10a   :  { %v157_v39 = vmax.f32 %v154_v36, 0.0 }
 0x10c   :  { %v165_v40 = vadd.f32 %v277_v37, %v157_v39 }
 0x10e   :  { %381 = vmatmul.mubr.f32.vlgmr.msra.gmra.mxu1 %v165_v40 }
 0x1ce   :  { %v255_v42 = vpop.f32.mrf.mxu1 }
 0x1cf   :  { %v256_v43 = vadd.f32 %v278_v41, %v255_v42 }
 0x1d0   :  { %v382_v44 = vpop.f32.mrf.mxu1 }
 0x1d1   :  { %259 = vst [vmem:[#allocation8] sm:$0xff] %v256_v43 }
 0x1d2   :  { %462 = shalt.err (!%p459_p5)
}
 0x1d3   :  { %269 = dma.vmem_to_hbm [thread:$0]  %s267_s18, 128, %s581_s6, [#allocation4]  }
 0x1d4   :  { %475 = dma.done.wait [#allocation4], 128  }
 0x1d5   :  { %476 = vsyncadd [#allocation4], 4294967168 }
 0x1d6   :  { %273 = vsyncpa [#allocation3], 1 }
 0x1d7   :  { %274 = vsyncpa [#allocation6], 1 }
 0x1d8   :  { %275 = vsyncpa [#allocation4], 1 }

</bundles_post_ra>
